<compile_context>
chip_gen: v5e
topology: v5e:2x2
jax: 0.10.0
libtpu: 0.0.40
codegen_flags: <defaults>
</compile_context>

<pallas_src>
import functools

import jax
import jax.numpy as jnp
from jax.experimental import pallas as pl
from jax.experimental.pallas import tpu as pltpu

MODULE_FACTOR = 0.5
INPUT_FACTOR = 1.0


def _round_up(x, m):
    return ((x + m - 1) // m) * m


def residual_linear_kernel(x_ref, w_ref, b_ref, o_ref, *, input_factor, matmul_dtype):
    # x_ref: (tm, H) in streaming dtype; w_ref: (H, H) in matmul_dtype (already
    # scaled by module_factor); b_ref: (1, H) f32 (already scaled by module_factor).
    x = x_ref[...]
    y = jnp.dot(x.astype(matmul_dtype), w_ref[...],
                preferred_element_type=jnp.float32)          # MXU, f32 accumulate
    y = y + b_ref[...]                                       # module_factor pre-folded
    res = x.astype(jnp.float32)
    if input_factor != 1.0:                                   # trace-time specialize
        res = res * input_factor
    o_ref[...] = (y + res).astype(o_ref.dtype)


def residual_connection(x, w, b, *, module_factor=MODULE_FACTOR,
                        input_factor=INPUT_FACTOR, tm=1024, matmul_dtype=None):
    """out = Linear(x) * module_factor + x * input_factor, over (B, T, H)."""
    B, T, H = x.shape
    M = B * T
    if matmul_dtype is None:
        # bf16 matmul (f32 accumulation) by default for f32 activations.
        matmul_dtype = jnp.bfloat16 if x.dtype == jnp.float32 else x.dtype

    x2d = x.reshape(M, H)                       # metadata-only, no HBM copy

    # Fold module_factor into the (tiny) weight / bias; pre-cast W to matmul dtype.
    # TODO(synk): in a real model, hoist this param prep out of the per-call path.
    w_p = (w.astype(jnp.float32) * module_factor).astype(matmul_dtype)
    b_p = (b.astype(jnp.float32) * module_factor).reshape(1, H)

    # Row tile: sublane-aligned; balance the grid (even count helps v7x's 2 TCs).
    tm = _round_up(max(tm, 8), 8)
    grid_m = pl.cdiv(M, tm)
    if grid_m > 1:
        grid_m = _round_up(grid_m, 2)
    tm_eff = min(_round_up(pl.cdiv(M, grid_m), 8), _round_up(M, 8))
    grid_m = pl.cdiv(M, tm_eff)                 # partial boundary block is fine:
    #   out-of-range rows are loaded as garbage but masked on the output store.

    # VMEM budget: double-buffered x & out tiles + BOTH buffers of W and bias + slack.
    out_dtype = x.dtype
    vmem_bytes = (2 * tm_eff * H * x2d.dtype.itemsize          # x tiles (2 bufs)
                  + 2 * tm_eff * H * jnp.dtype(out_dtype).itemsize  # out tiles (2 bufs)
                  + 2 * H * H * w_p.dtype.itemsize             # weight (2 bufs)
                  + 2 * H * b_p.dtype.itemsize                 # bias   (2 bufs)
                  + (4 << 20))                                  # slack
    try:
        vmem_cap = int(pltpu.get_tpu_info().vmem_capacity_bytes)
    except Exception:
        vmem_cap = 64 << 20                                     # v7x per-TC VMEM
    vmem_limit = int(max(min(vmem_bytes, vmem_cap - (8 << 20)), 16 << 20))

    kernel = functools.partial(
        residual_linear_kernel,
        input_factor=float(input_factor),
        matmul_dtype=matmul_dtype,
    )

    out2d = pl.pallas_call(
        kernel,
        out_shape=jax.ShapeDtypeStruct((M, H), out_dtype),
        grid_spec=pltpu.PrefetchScalarGridSpec(
            num_scalar_prefetch=0,
            grid=(grid_m,),
            in_specs=[
                pl.BlockSpec((tm_eff, H), lambda i: (i, 0)),    # x rows
                pl.BlockSpec((H, H), lambda i: (0, 0)),         # weight (resident)
                pl.BlockSpec((1, H), lambda i: (0, 0)),         # bias   (resident)
            ],
            out_specs=pl.BlockSpec((tm_eff, H), lambda i: (i, 0)),
        ),
        compiler_params=pltpu.CompilerParams(
            dimension_semantics=("parallel",),
            vmem_limit_bytes=vmem_limit,
        ),
    )(x2d, w_p, b_p)

    return out2d.reshape(B, T, H)               # metadata-only, no HBM copy


if __name__ == "__main__":
    key = jax.random.PRNGKey(0)

    # --- small shape from the module spec (H < 128, M < tile; f32 matmul path) ---
    B, T, H = 2, 8, 32
    kx, kw, kb, k2 = jax.random.split(key, 4)
    x = jax.random.normal(kx, (B, T, H), dtype=jnp.float32)
    w = jax.random.normal(kw, (H, H), dtype=jnp.float32) * (1.0 / jnp.sqrt(H))
    b = jax.random.normal(kb, (H,), dtype=jnp.float32) * 0.01

    out = jax.block_until_ready(residual_connection(x, w, b, matmul_dtype=jnp.float32))
    ref = (x @ w + b) * MODULE_FACTOR + x * INPUT_FACTOR
    assert out.shape == (B, T, H)
    assert jnp.allclose(out, ref, atol=1e-5, rtol=1e-5), "f32 mismatch vs reference"

    # --- ragged M (1040 rows -> grid of 2 balanced 520-row tiles), bf16 streaming
    #     for x/out and bf16 MXU path with f32 accumulation + f32 residual add ---
    B2, T2, H2 = 2, 520, 128
    kx2, kw2, kb2 = jax.random.split(k2, 3)
    x2 = jax.random.normal(kx2, (B2, T2, H2), dtype=jnp.float32).astype(jnp.bfloat16)
    w2 = jax.random.normal(kw2, (H2, H2), dtype=jnp.float32) * (1.0 / jnp.sqrt(H2))
    b2 = jax.random.normal(kb2, (H2,), dtype=jnp.float32) * 0.01

    out2 = jax.block_until_ready(residual_connection(x2, w2, b2))
    x2f = x2.astype(jnp.float32)
    ref2 = (x2f @ w2 + b2) * MODULE_FACTOR + x2f * INPUT_FACTOR
    assert out2.dtype == jnp.bfloat16
    assert jnp.allclose(out2.astype(jnp.float32), ref2, atol=5e-2, rtol=5e-2), \
        "bf16 mismatch vs reference"

    print("KERNEL_OK")
</pallas_src>

<mosaic_0001>
module attributes {stable_mosaic.version = 11 : i64} {
  func.func @residual_linear_kernel(%arg0: i32, %arg1: memref<16x32xf32, #tpu.memory_space<vmem>>, %arg2: memref<32x32xf32, #tpu.memory_space<vmem>>, %arg3: memref<1x32xf32, #tpu.memory_space<vmem>>, %arg4: memref<16x32xf32, #tpu.memory_space<vmem>>) attributes {dimension_semantics = [#tpu.dimension_semantics<parallel>], iteration_bounds = array<i64: 1>, scalar_prefetch = 0 : i64, scratch_operands = 0 : i64, tpu.core_type = #tpu.core_type<tc>, window_params = [{transform_indices = @transform_0, window_bounds = array<i64: 16, 32>}, {pipeline_mode = #tpu.pipeline_mode<synchronous>, transform_indices = @transform_1, window_bounds = array<i64: 32, 32>}, {pipeline_mode = #tpu.pipeline_mode<synchronous>, transform_indices = @transform_2, window_bounds = array<i64: 1, 32>}, {transform_indices = @transform_3, window_bounds = array<i64: 16, 32>}]} {
    %c0 = arith.constant 0 : index
    %c0_0 = arith.constant 0 : index
    %0 = vector.load %arg1[%c0, %c0_0] : memref<16x32xf32, #tpu.memory_space<vmem>>, vector<16x32xf32>
    %c0_1 = arith.constant 0 : index
    %c0_2 = arith.constant 0 : index
    %1 = vector.load %arg2[%c0_1, %c0_2] : memref<32x32xf32, #tpu.memory_space<vmem>>, vector<32x32xf32>
    %cst = arith.constant dense<0.000000e+00> : vector<16x32xf32>
    %2 = tpu.matmul %0, %1, %cst {dimension_numbers = #tpu.dot_dimension_numbers<[1], [0], [0], [1], [0, 0, 1, 1], [], []>} : vector<16x32xf32>, vector<32x32xf32>, vector<16x32xf32> -> vector<16x32xf32>
    %c0_3 = arith.constant 0 : index
    %c0_4 = arith.constant 0 : index
    %3 = vector.load %arg3[%c0_3, %c0_4] : memref<1x32xf32, #tpu.memory_space<vmem>>, vector<1x32xf32>
    %4 = vector.broadcast %3 : vector<1x32xf32> to vector<16x32xf32>
    %5 = arith.addf %2, %4 : vector<16x32xf32>
    %6 = arith.addf %5, %0 : vector<16x32xf32>
    %c0_5 = arith.constant 0 : index
    %c0_6 = arith.constant 0 : index
    %7 = vector.load %arg4[%c0_5, %c0_6] : memref<16x32xf32, #tpu.memory_space<vmem>>, vector<16x32xf32>
    tpu.vector_store %arg4[%c0_5, %c0_6], %6 {strides = array<i32>} : memref<16x32xf32, #tpu.memory_space<vmem>>, vector<16x32xf32>,
    return
  }
  func.func @transform_0(%arg0: i32) -> (i32, i32) {
    %c0_i32 = arith.constant 0 : i32
    %c0_i32_0 = arith.constant 0 : i32
    return %arg0, %c0_i32 : i32, i32
  }
  func.func @transform_1(%arg0: i32) -> (i32, i32) {
    %c0_i32 = arith.constant 0 : i32
    %c0_i32_0 = arith.constant 0 : i32
    %c0_i32_1 = arith.constant 0 : i32
    return %c0_i32, %c0_i32_0 : i32, i32
  }
  func.func @transform_2(%arg0: i32) -> (i32, i32) {
    %c0_i32 = arith.constant 0 : i32
    %c0_i32_0 = arith.constant 0 : i32
    %c0_i32_1 = arith.constant 0 : i32
    return %c0_i32, %c0_i32_0 : i32, i32
  }
  func.func @transform_3(%arg0: i32) -> (i32, i32) {
    %c0_i32 = arith.constant 0 : i32
    %c0_i32_0 = arith.constant 0 : i32
    return %arg0, %c0_i32 : i32, i32
  }
}

</mosaic_0001>

<bundles_post_ra>
// kernel: tpu_custom_call.1
= control target key start
LH: loop header
LB: loop body
LE: loop exit
PB: predicated region body
PF: predicated region fallthrough
CT: control target
= control target key end

     0   :  { %8 = vsyncpa [#allocation3], 0  ;;  %s251_s0 = inlined_call_operand.hbm [shape: f32[16,32], index: 0, kind: input, shape index: {}]   ;;  %s252_s1 = inlined_call_operand.hbm [shape: f32[32,32], index: 1, kind: input, shape index: {}]   ;;  %s253_s2 = inlined_call_operand.vmem [shape: f32[1,32], index: 2, kind: input, shape index: {}]   ;;  %s254_s3 = inlined_call_operand.hbm [shape: f32[16,32], index: 3, kind: output, shape index: {}]  }
   0x1   :  { %9 = vsyncpa [#allocation6], 0 }
   0x2   :  { %10 = vsyncpa [#allocation4], 0  ;;  %s15_s14 = sshll.u32 %s251_s0, 4  ;;  %s201_s15 = smov [#allocation2]   ;;  %s16_s14 = int_to_ptr.hbm [resolvable:$true] %s15_s14 }
   0x3   :  { %s17_s16 = sshll.u32 %s201_s15, 4  ;;  %s28_s19 = sshll.u32 %s252_s1, 4  ;;  %s18_s16 = int_to_ptr.vmem [resolvable:$true] %s17_s16  ;;  %s29_s19 = int_to_ptr.hbm [resolvable:$true] %s28_s19 }
   0x4   :  { %s202_s20 = smov 128   ;;  %s203_s21 = smov 8  }
   0x5   :  { %23 = dma.hbm_to_vmem [thread:$0]  %s16_s14, 256, %s18_s16, [#allocation3], %s202_s20, %s202_s20, %s203_s21  }
   0x6   :  { %s204_s22 = smov [#allocation5]  }
   0x7   :  { %s30_s23 = sshll.u32 %s204_s22, 4  ;;  %s31_s23 = int_to_ptr.vmem [resolvable:$true] %s30_s23 }
   0x8   :  { %36 = dma.hbm_to_vmem [thread:$0]  %s29_s19, 512, %s31_s23, [#allocation6], %s202_s20, %s202_s20, %s203_s21  }
   0x9   :  { %195 = dma.done.wait [#allocation3], 256  }
   0xa   :  { %196 = vsyncadd [#allocation3], 4294967040 }
   0xb   :  { %197 = dma.done.wait [#allocation6], 512  }
   0xc   :  { %198 = vsyncadd [#allocation6], 4294966784  ;;  %v52_v0 = vld [vmem:[#allocation5 + $0x18] sm:$0xff]  ;;  %v51_v1 = vld [vmem:[#allocation5 + $0x10] sm:$0xff]  ;;  %vm57_vm0 = vcmask 261120   ;;  %s205_s24 = smov [#allocation7]  }
   0xd   :  { %76 = vmatpush.msra.mxu0 %v52_v0  ;;  %113 = vmatpush.msra.mxu1 %v52_v0  ;;  %v50_v2 = vld [vmem:[#allocation5 + $0x8] sm:$0xff]  ;;  %v49_v3 = vld [vmem:[#allocation5] sm:$0xff]  ;;  %v47_v4 = vld [vmem:[#allocation2] sm:$0xff]  ;;  %s95_s25 = sshll.u32 %s205_s24, 4  ;;  %s97_s28 = sshll.u32 %s254_s3, 4  ;;  %s96_s25 = int_to_ptr.vmem [resolvable:$true] %s95_s25  ;;  %s98_s28 = int_to_ptr.hbm [resolvable:$true] %s97_s28 }
   0xe   :  { %v48_v5 = vld [vmem:[#allocation2 + $0x8] sm:$0xff]  ;;  %v122_v6 = vld [vmem:[%s253_s2] ss:$0 sm:$0xff] }
   0xf   :  { %77 = vmatpush.msra.mxu0 %v51_v1  ;;  %114 = vmatpush.msra.mxu1 %v51_v1 }
  0x11   :  { %78 = vmatpush.msra.mxu0 %v50_v2  ;;  %115 = vmatpush.msra.mxu1 %v50_v2 }
  0x13   :  { %79 = vmatpush.msra.mxu0 %v49_v3  ;;  %116 = vmatpush.msra.mxu1 %v49_v3 }
  0x14   :  { %111 = vmatmul.msk.f32.vlgmr.msra.gmra.mxu0 %vm57_vm0, %v47_v4  ;;  %112 = vmatmul.msk.f32.vlgmr.msra.gmra.mxu1 %vm57_vm0, %v48_v5 }
  0x91   :  { %v81_v7 = vpop.f32.mrf.mxu0  ;;  %v84_v8 = vpop.f32.mrf.mxu1 }
  0x92   :  { %v82_v9 = vadd.f32 %v122_v6, %v81_v7  ;;  %v85_v10 = vadd.f32 %v122_v6, %v84_v8 }
  0x94   :  { %v87_v11 = vadd.f32 %v82_v9, %v47_v4  ;;  %v88_v12 = vadd.f32 %v85_v10, %v48_v5 }
  0x96   :  { %89 = vst.msk [vmem:[#allocation7] sm:$0xff] %vm57_vm0, %v87_v11 }
  0x97   :  { %90 = vst.msk [vmem:[#allocation7 + $0x8] sm:$0xff] %vm57_vm0, %v88_v12 }
  0x98   :  { %103 = dma.vmem_to_hbm [thread:$0]  %s96_s25, 256, %s98_s28, [#allocation4], %s202_s20, %s202_s20, %s203_s21  }
  0x99   :  { %199 = dma.done.wait [#allocation4], 256  }
  0x9a   :  { %200 = vsyncadd [#allocation4], 4294967040 }
  0x9b   :  { %108 = vsyncpa [#allocation3], 1 }
  0x9c   :  { %109 = vsyncpa [#allocation6], 1 }
  0x9d   :  { %110 = vsyncpa [#allocation4], 1 }

</bundles_post_ra>
